<compile_context>
chip_gen: v5e
topology: v5e:2x2
jax: 0.10.0
libtpu: 0.0.40
codegen_flags: <defaults>
</compile_context>

<pallas_src>
import functools

import jax
import jax.numpy as jnp
from jax.experimental import pallas as pl
from jax.experimental.pallas import tpu as pltpu


# ---------------------------------------------------------------------------
# Pallas kernels
# ---------------------------------------------------------------------------

def _dense_kernel(x_ref, w_ref, b_ref, o_ref):
    """o = x @ W + b  (bf16 inputs, f32 accumulation, bf16 output)."""
    acc = jnp.dot(x_ref[...], w_ref[...], preferred_element_type=jnp.float32)
    o_ref[...] = (acc + b_ref[...]).astype(o_ref.dtype)


def _pad_ring_f32(act, hin, win, cin):
    """Zero ring: (hin, win, cin) -> (hin+2, win+2, cin), built in VMEM only.

    The ring encodes "no input pixel contributes here" for boundary taps of the
    transposed convolution (there is no real input padding in ConvTranspose2d).
    """
    zr = jnp.zeros((1, win, cin), jnp.float32)
    zc = jnp.zeros((hin + 2, 1, cin), jnp.float32)
    xp = jnp.concatenate([zr, act, zr], axis=0)
    return jnp.concatenate([zc, xp, zc], axis=1)


def _deconv4x4s2_kernel(x_ref, sc_ref, sh_ref, w_ref,
                        o_ref, sum_ref, ssq_ref,
                        *, hin, win, cin, cout):
    """Fused CondBN-affine + ReLU + ConvTranspose2d(k=4, s=2, p=1, bias=False).

    Sub-pixel decomposition: out[2my+ry, 2mx+rx] = sum_{dy,dx in {0,1}}
        xpad[my+ry+dy, mx+rx+dx] @ W[:, :, 3-ry-2dy, 3-rx-2dx]
    with xpad a 1-wide zero ring around the (BN+ReLU'd) input.

    x_ref  : (1, hin, win, cin)      bf16 raw (pre-norm) activation, one sample
    sc_ref : (1, 1, cin)             f32  per-sample CBN scale
    sh_ref : (1, 1, cin)             f32  per-sample CBN shift
    w_ref  : (16, cin, cout)         bf16 packed sub-pixel tap matrices
    o_ref  : (1, 4, hin, win, cout)  bf16 sub-pixel outputs (p = ry*2 + rx)
    sum_ref, ssq_ref : (1, 1, cout)  f32  per-sample channel sums (next BN)
    """
    x = x_ref[0].astype(jnp.float32)                              # (hin, win, cin)
    act = jnp.maximum(x * sc_ref[...] + sh_ref[...], 0.0)         # CBN affine + ReLU
    xp = _pad_ring_f32(act, hin, win, cin)                        # (hin+2, win+2, cin)

    # 9 distinct shifted windows, flattened to (hin*win, cin) matmul LHS (bf16).
    taps = {}
    for a in range(3):
        for b in range(3):
            taps[(a, b)] = (xp[a:a + hin, b:b + win, :]
                            .reshape(hin * win, cin).astype(jnp.bfloat16))

    s = jnp.zeros((1, cout), jnp.float32)
    ss = jnp.zeros((1, cout), jnp.float32)
    for ry in range(2):
        for rx in range(2):
            acc = jnp.zeros((hin * win, cout), jnp.float32)
            for dy in range(2):
                for dx in range(2):
                    t = ry * 8 + rx * 4 + dy * 2 + dx
                    acc = acc + jnp.dot(taps[(ry + dy, rx + dx)], w_ref[t],
                                        preferred_element_type=jnp.float32)
            s = s + jnp.sum(acc, axis=0, keepdims=True)
            ss = ss + jnp.sum(acc * acc, axis=0, keepdims=True)
            o_ref[0, ry * 2 + rx] = acc.reshape(hin, win, cout).astype(o_ref.dtype)
    sum_ref[0] = s
    ssq_ref[0] = ss


def _convt3x3s1_kernel(x_ref, sc_ref, sh_ref, w_ref, b_ref, o_ref,
                       *, hin, win, cin, cout):
    """Fused CondBN-affine + ReLU + ConvTranspose2d(k=3, s=1, p=1, bias) + tanh.

    Stride-1 transposed conv == regular conv with the flipped kernel:
        out[oy, ox] = sum_{dy,dx in {0,1,2}} xpad[oy+dy, ox+dx] @ W[:, :, 2-dy, 2-dx]
    """
    x = x_ref[0].astype(jnp.float32)
    act = jnp.maximum(x * sc_ref[...] + sh_ref[...], 0.0)
    xp = _pad_ring_f32(act, hin, win, cin)

    acc = jnp.zeros((hin * win, cout), jnp.float32)
    for dy in range(3):
        for dx in range(3):
            tap = (xp[dy:dy + hin, dx:dx + win, :]
                   .reshape(hin * win, cin).astype(jnp.bfloat16))
            acc = acc + jnp.dot(tap, w_ref[dy * 3 + dx],
                                preferred_element_type=jnp.float32)
    out = jnp.tanh(acc + b_ref[...])
    o_ref[0] = out.reshape(hin, win, cout).astype(o_ref.dtype)


# ---------------------------------------------------------------------------
# pallas_call wrappers
# ---------------------------------------------------------------------------

def dense_forward(z, w, b):
    """z: (B, Z) bf16, w: (Z, F) bf16 (NHWC-permuted), b: (1, F) f32 -> (B, F) bf16."""
    B, Z = z.shape
    F = w.shape[1]
    return pl.pallas_call(
        _dense_kernel,
        out_shape=jax.ShapeDtypeStruct((B, F), jnp.bfloat16),
        grid=(1,),
        in_specs=[pl.BlockSpec((B, Z), lambda i: (0, 0)),
                  pl.BlockSpec((Z, F), lambda i: (0, 0)),
                  pl.BlockSpec((1, F), lambda i: (0, 0))],
        out_specs=pl.BlockSpec((B, F), lambda i: (0, 0)),
        compiler_params=pltpu.CompilerParams(
            dimension_semantics=("arbitrary",)),
        cost_estimate=pl.CostEstimate(
            flops=2 * B * Z * F, transcendentals=0,
            bytes_accessed=2 * (B * Z + Z * F + B * F) + 4 * F),
    )(z, w, b)


def deconv4x4s2_cbn_relu(x, scale, shift, w_packed):
    """Fused CBN + ReLU + ConvTranspose2d(4, 2, 1).  Returns output and BN sums."""
    N, Hin, Win, Cin = x.shape
    Cout = w_packed.shape[-1]
    kernel = functools.partial(_deconv4x4s2_kernel,
                               hin=Hin, win=Win, cin=Cin, cout=Cout)
    flops = 2 * N * Hin * Win * 16 * Cin * Cout
    bytes_accessed = (2 * N * Hin * Win * Cin + 2 * 16 * Cin * Cout
                      + 2 * N * 4 * Hin * Win * Cout
                      + 4 * N * 2 * Cin + 4 * N * 2 * Cout)
    out5, s, ss = pl.pallas_call(
        kernel,
        out_shape=(jax.ShapeDtypeStruct((N, 4, Hin, Win, Cout), jnp.bfloat16),
                   jax.ShapeDtypeStruct((N, 1, Cout), jnp.float32),
                   jax.ShapeDtypeStruct((N, 1, Cout), jnp.float32)),
        grid=(N,),
        in_specs=[pl.BlockSpec((1, Hin, Win, Cin), lambda n: (n, 0, 0, 0)),
                  pl.BlockSpec((1, 1, Cin), lambda n: (n, 0, 0)),
                  pl.BlockSpec((1, 1, Cin), lambda n: (n, 0, 0)),
                  # Grid-invariant weight block (tiny at demo scale).
                  # TODO(synk): at large Cin*Cout use pipeline_mode=pl.Buffered(1)
                  # so the constant weight is not double-buffered.
                  pl.BlockSpec((16, Cin, Cout), lambda n: (0, 0, 0))],
        out_specs=(pl.BlockSpec((1, 4, Hin, Win, Cout),
                                lambda n: (n, 0, 0, 0, 0)),
                   pl.BlockSpec((1, 1, Cout), lambda n: (n, 0, 0)),
                   pl.BlockSpec((1, 1, Cout), lambda n: (n, 0, 0))),
        compiler_params=pltpu.CompilerParams(
            dimension_semantics=("parallel",)),
        cost_estimate=pl.CostEstimate(flops=flops, transcendentals=0,
                                      bytes_accessed=bytes_accessed),
    )(x, scale, shift, w_packed)
    # Sub-pixel interleave: (N, ry*2+rx, my, mx, C) -> (N, 2my+ry, 2mx+rx, C).
    # The trailing reshape is layout-preserving; only the small transpose is real.
    y = out5.reshape(N, 2, 2, Hin, Win, Cout).transpose(0, 3, 1, 4, 2, 5)
    y = y.reshape(N, 2 * Hin, 2 * Win, Cout)
    return y, s, ss


def convt3x3s1_cbn_relu_tanh(x, scale, shift, w_packed, bias):
    """Fused CBN + ReLU + ConvTranspose2d(3, 1, 1, bias=True) + tanh."""
    N, Hin, Win, Cin = x.shape
    Cout = w_packed.shape[-1]
    kernel = functools.partial(_convt3x3s1_kernel,
                               hin=Hin, win=Win, cin=Cin, cout=Cout)
    return pl.pallas_call(
        kernel,
        out_shape=jax.ShapeDtypeStruct((N, Hin, Win, Cout), jnp.float32),
        grid=(N,),
        in_specs=[pl.BlockSpec((1, Hin, Win, Cin), lambda n: (n, 0, 0, 0)),
                  pl.BlockSpec((1, 1, Cin), lambda n: (n, 0, 0)),
                  pl.BlockSpec((1, 1, Cin), lambda n: (n, 0, 0)),
                  pl.BlockSpec((9, Cin, Cout), lambda n: (0, 0, 0)),
                  pl.BlockSpec((1, Cout), lambda n: (0, 0))],
        out_specs=pl.BlockSpec((1, Hin, Win, Cout), lambda n: (n, 0, 0, 0)),
        compiler_params=pltpu.CompilerParams(
            dimension_semantics=("parallel",)),
        cost_estimate=pl.CostEstimate(
            flops=2 * N * Hin * Win * 9 * Cin * Cout,
            transcendentals=N * Hin * Win * Cout,
            bytes_accessed=(2 * N * Hin * Win * Cin + 2 * 9 * Cin * Cout
                            + 4 * N * Hin * Win * Cout)),
    )(x, scale, shift, w_packed, bias)


# ---------------------------------------------------------------------------
# Plain-JAX glue: weight packing, spectral norm, CBN statistics, params
# ---------------------------------------------------------------------------

def spectral_normalize(w, n_iter=30):
    """Power-iteration spectral norm applied once at init (weight / sigma).

    TODO(synk): PyTorch's spectral_norm keeps a persistent random `u` updated
    by ONE iteration per forward; this init-time variant matches the converged
    normalized weight but not bit-for-bit training dynamics.
    """
    w_mat = w.reshape(w.shape[0], -1)
    u = jnp.ones((w_mat.shape[0],), jnp.float32) / jnp.sqrt(w_mat.shape[0])
    for _ in range(n_iter):
        v = w_mat.T @ u
        v = v / (jnp.linalg.norm(v) + 1e-12)
        u = w_mat @ v
        u = u / (jnp.linalg.norm(u) + 1e-12)
    sigma = u @ (w_mat @ v)
    return w / sigma


def pack_deconv4x4_weight(w):
    """(Cin, Cout, 4, 4) PyTorch ConvTranspose2d weight -> (16, Cin, Cout) bf16 taps."""
    mats = []
    for ry in range(2):
        for rx in range(2):
            for dy in range(2):
                for dx in range(2):
                    mats.append(w[:, :, 3 - ry - 2 * dy, 3 - rx - 2 * dx])
    return jnp.stack(mats, axis=0).astype(jnp.bfloat16)


def pack_convt3x3_weight(w):
    """(Cin, Cout, 3, 3) ConvTranspose2d weight -> (9, Cin, Cout) bf16 (flipped taps)."""
    mats = []
    for dy in range(3):
        for dx in range(3):
            mats.append(w[:, :, 2 - dy, 2 - dx])
    return jnp.stack(mats, axis=0).astype(jnp.bfloat16)


def _cbn_scale_shift(mean, var, gamma, beta, eps=1e-5):
    """Fold batch-norm stats + class embedding into per-sample scale/shift."""
    inv = jax.lax.rsqrt(var + eps)                 # (C,)
    scale = gamma * inv[None, :]                   # (N, C)
    shift = beta - mean[None, :] * scale
    n, c = scale.shape
    return (scale.reshape(n, 1, c).astype(jnp.float32),
            shift.reshape(n, 1, c).astype(jnp.float32))


def _combine_stats(s, ss, count):
    """Per-sample channel sums -> batch mean / biased variance."""
    tot = jnp.sum(s, axis=0)[0]                    # (C,)
    tot2 = jnp.sum(ss, axis=0)[0]
    mean = tot / count
    var = jnp.maximum(tot2 / count - mean * mean, 0.0)
    return mean, var


def init_generator_params(key, in_channels, channels, out_channels,
                          num_classes, size, use_sn=True):
    h, w = size
    assert h % 8 == 0 and w % 8 == 0
    h8, w8 = h // 8, w // 8
    c8 = channels * 8
    feat = h8 * w8 * c8
    keys = jax.random.split(key, 12)

    # dense: PyTorch nn.Linear weight is (feat, in_channels).
    wd = jax.random.normal(keys[0], (feat, in_channels), jnp.float32) * 0.05
    bd = jax.random.normal(keys[1], (feat,), jnp.float32) * 0.01
    if use_sn:
        wd = spectral_normalize(wd)
    # Pre-transpose to (Z, feat) and permute columns from the PyTorch
    # .view(B, C8, h8, w8) order into NHWC-flatten order so the kernel output
    # reshapes to (B, h8, w8, C8) with zero runtime data movement.
    wdt = wd.T.reshape(in_channels, c8, h8, w8).transpose(0, 2, 3, 1)
    wdt = wdt.reshape(in_channels, feat).astype(jnp.bfloat16)
    bdp = bd.reshape(c8, h8, w8).transpose(1, 2, 0).reshape(1, feat)
    bdp = bdp.astype(jnp.float32)

    # ConditionalBatchNorm2d class embeddings: gamma ~ N(1, 0.02), beta = 0.
    # TODO(synk): ConditionalBatchNorm2d is not defined in the reference file;
    # the standard horch implementation (affine-free BN + class embedding) is
    # assumed, using training-mode batch statistics.
    ch_list = [c8, channels * 4, channels * 2, channels]
    cbn = []
    for i, c in enumerate(ch_list):
        gamma = 1.0 + 0.02 * jax.random.normal(keys[2 + i], (num_classes, c),
                                               jnp.float32)
        beta = jnp.zeros((num_classes, c), jnp.float32)
        cbn.append((gamma, beta))

    # ConvTranspose2d(k=4, s=2, p=1, bias=False) weights, PyTorch layout
    # (Cin, Cout, 4, 4); spectral-normalized then packed into sub-pixel taps.
    deconv_cfg = [(c8, channels * 4), (channels * 4, channels * 2),
                  (channels * 2, channels)]
    deconv = []
    for i, (cin, cout) in enumerate(deconv_cfg):
        wk = jax.random.normal(keys[6 + i], (cin, cout, 4, 4), jnp.float32) * 0.05
        if use_sn:
            wk = spectral_normalize(wk)
        deconv.append(pack_deconv4x4_weight(wk))

    # Final ConvTranspose2d(channels, out_channels, k=3, s=1, p=1, bias=True).
    w4 = jax.random.normal(keys[9], (channels, out_channels, 3, 3),
                           jnp.float32) * 0.05
    b4 = jax.random.normal(keys[10], (out_channels,), jnp.float32) * 0.01
    if use_sn:
        w4 = spectral_normalize(w4)
    conv4 = (pack_convt3x3_weight(w4),
             b4.reshape(1, out_channels).astype(jnp.float32))

    return {"dense": (wdt, bdp), "cbn": cbn, "deconv": deconv, "conv4": conv4,
            "dims": (h8, w8, c8)}


def generator_forward(params, z, y, eps=1e-5):
    """z: (B, in_channels) latent, y: (B,) int class labels -> (B, C_out, H, W)."""
    B = z.shape[0]
    h8, w8, c8 = params["dims"]

    wd, bd = params["dense"]
    hflat = dense_forward(z.astype(jnp.bfloat16), wd, bd)     # (B, F) bf16, NHWC order
    x = hflat.reshape(B, h8, w8, c8)                          # free reshape

    # bn1 statistics (dense output is tiny; plain-JAX reduction, f32).
    xf = x.astype(jnp.float32)
    mean = jnp.mean(xf, axis=(0, 1, 2))
    var = jnp.maximum(jnp.mean(xf * xf, axis=(0, 1, 2)) - mean * mean, 0.0)

    # Three fused CBN + ReLU + ConvTranspose2d(4,2,1) stages; each emits the
    # channel sums needed for the next stage's batch norm.
    for li, w_packed in enumerate(params["deconv"]):
        gamma, beta = params["cbn"][li]
        scale, shift = _cbn_scale_shift(mean, var, gamma[y], beta[y], eps)
        x, s, ss = deconv4x4s2_cbn_relu(x, scale, shift, w_packed)
        count = x.shape[0] * x.shape[1] * x.shape[2]
        mean, var = _combine_stats(s, ss, count)

    # Final fused CBN + ReLU + ConvTranspose2d(3,1,1) + bias + tanh.
    gamma, beta = params["cbn"][3]
    scale, shift = _cbn_scale_shift(mean, var, gamma[y], beta[y], eps)
    w4, b4 = params["conv4"]
    out = convt3x3s1_cbn_relu_tanh(x, scale, shift, w4, b4)   # (B, H, W, Cout) f32
    return jnp.transpose(out, (0, 3, 1, 2))                   # NCHW like PyTorch


# ---------------------------------------------------------------------------

if __name__ == "__main__":
    key = jax.random.PRNGKey(0)
    kp, kz, ky = jax.random.split(key, 3)

    batch = 2
    in_channels = 32          # latent dimension
    channels = 8
    out_channels = 3
    num_classes = 10
    size = (32, 32)

    params = init_generator_params(kp, in_channels, channels, out_channels,
                                   num_classes, size, use_sn=True)
    z = jax.random.normal(kz, (batch, in_channels), jnp.float32)
    y = jax.random.randint(ky, (batch,), 0, num_classes)

    out = generator_forward(params, z, y)
    out = jax.block_until_ready(out)

    assert out.shape == (batch, out_channels, size[0], size[1]), out.shape
    assert out.dtype == jnp.float32
    assert bool(jnp.all(jnp.isfinite(out)))
    assert bool(jnp.all(jnp.abs(out) <= 1.0 + 1e-5))   # tanh range
    print("KERNEL_OK")
</pallas_src>

<mosaic_0001>
module attributes {stable_mosaic.version = 11 : i64} {
  func.func @_dense_kernel(%arg0: i32, %arg1: memref<2x32xbf16, #tpu.memory_space<vmem>>, %arg2: memref<32x1024xbf16, #tpu.memory_space<vmem>>, %arg3: memref<1x1024xf32, #tpu.memory_space<vmem>>, %arg4: memref<2x1024xbf16, #tpu.memory_space<vmem>>) attributes {dimension_semantics = [#tpu.dimension_semantics<arbitrary>], iteration_bounds = array<i64: 1>, scalar_prefetch = 0 : i64, scratch_operands = 0 : i64, tpu.core_type = #tpu.core_type<tc>, window_params = [{pipeline_mode = #tpu.pipeline_mode<synchronous>, transform_indices = @transform_0, window_bounds = array<i64: 2, 32>}, {pipeline_mode = #tpu.pipeline_mode<synchronous>, transform_indices = @transform_1, window_bounds = array<i64: 32, 1024>}, {pipeline_mode = #tpu.pipeline_mode<synchronous>, transform_indices = @transform_2, window_bounds = array<i64: 1, 1024>}, {pipeline_mode = #tpu.pipeline_mode<synchronous>, transform_indices = @transform_3, window_bounds = array<i64: 2, 1024>}]} {
    %c0 = arith.constant 0 : index
    %c0_0 = arith.constant 0 : index
    %0 = vector.load %arg1[%c0, %c0_0] : memref<2x32xbf16, #tpu.memory_space<vmem>>, vector<2x32xbf16>
    %c0_1 = arith.constant 0 : index
    %c0_2 = arith.constant 0 : index
    %1 = vector.load %arg2[%c0_1, %c0_2] : memref<32x1024xbf16, #tpu.memory_space<vmem>>, vector<32x1024xbf16>
    %cst = arith.constant dense<0.000000e+00> : vector<2x1024xf32>
    %2 = tpu.matmul %0, %1, %cst {dimension_numbers = #tpu.dot_dimension_numbers<[1], [0], [0], [1], [0, 0, 1, 1], [], []>} : vector<2x32xbf16>, vector<32x1024xbf16>, vector<2x1024xf32> -> vector<2x1024xf32>
    %c0_3 = arith.constant 0 : index
    %c0_4 = arith.constant 0 : index
    %3 = vector.load %arg3[%c0_3, %c0_4] : memref<1x1024xf32, #tpu.memory_space<vmem>>, vector<1x1024xf32>
    %4 = vector.broadcast %3 : vector<1x1024xf32> to vector<2x1024xf32>
    %5 = arith.addf %2, %4 : vector<2x1024xf32>
    %6 = arith.truncf %5 : vector<2x1024xf32> to vector<2x1024xbf16>
    %c0_5 = arith.constant 0 : index
    %c0_6 = arith.constant 0 : index
    %7 = vector.load %arg4[%c0_5, %c0_6] : memref<2x1024xbf16, #tpu.memory_space<vmem>>, vector<2x1024xbf16>
    tpu.vector_store %arg4[%c0_5, %c0_6], %6 {strides = array<i32>} : memref<2x1024xbf16, #tpu.memory_space<vmem>>, vector<2x1024xbf16>,
    return
  }
  func.func @transform_0(%arg0: i32) -> (i32, i32) {
    %c0_i32 = arith.constant 0 : i32
    %c0_i32_0 = arith.constant 0 : i32
    %c0_i32_1 = arith.constant 0 : i32
    return %c0_i32, %c0_i32_0 : i32, i32
  }
  func.func @transform_1(%arg0: i32) -> (i32, i32) {
    %c0_i32 = arith.constant 0 : i32
    %c0_i32_0 = arith.constant 0 : i32
    %c0_i32_1 = arith.constant 0 : i32
    return %c0_i32, %c0_i32_0 : i32, i32
  }
  func.func @transform_2(%arg0: i32) -> (i32, i32) {
    %c0_i32 = arith.constant 0 : i32
    %c0_i32_0 = arith.constant 0 : i32
    %c0_i32_1 = arith.constant 0 : i32
    return %c0_i32, %c0_i32_0 : i32, i32
  }
  func.func @transform_3(%arg0: i32) -> (i32, i32) {
    %c0_i32 = arith.constant 0 : i32
    %c0_i32_0 = arith.constant 0 : i32
    %c0_i32_1 = arith.constant 0 : i32
    return %c0_i32, %c0_i32_0 : i32, i32
  }
}

</mosaic_0001>

<bundles_post_ra>
// kernel: tpu_custom_call.1
= control target key start
LH: loop header
LB: loop body
LE: loop exit
PB: predicated region body
PF: predicated region fallthrough
CT: control target
= control target key end

     0   :  { %8 = vsyncpa [#allocation3], 0  ;;  %s581_s0 = inlined_call_operand.hbm [shape: bf16[2,32], index: 0, kind: input, shape index: {}]   ;;  %s582_s1 = inlined_call_operand.hbm [shape: bf16[32,1024], index: 1, kind: input, shape index: {}]   ;;  %s583_s2 = inlined_call_operand.hbm [shape: f32[1,1024], index: 2, kind: input, shape index: {}]   ;;  %s584_s3 = inlined_call_operand.hbm [shape: bf16[2,1024], index: 3, kind: output, shape index: {}]  }
   0x1   :  { %9 = vsyncpa [#allocation6], 0  ;;  %s26_s14 = sshll.u32 %s582_s1, 4  ;;  %s27_s14 = int_to_ptr.hbm [resolvable:$true] %s26_s14 }
   0x2   :  { %10 = vsyncpa [#allocation4], 0  ;;  %s535_s15 = smov [#allocation5]   ;;  %s16_s19 = sshll.u32 %s581_s0, 4  ;;  %s17_s19 = int_to_ptr.hbm [resolvable:$true] %s16_s19 }
   0x3   :  { %s28_s16 = sshll.u32 %s535_s15, 4  ;;  %s536_s20 = smov 512   ;;  %s29_s16 = int_to_ptr.vmem [resolvable:$true] %s28_s16 }
   0x4   :  { %s537_s21 = smov 32   ;;  %s538_s22 = smov [#allocation2]  }
   0x5   :  { %34 = dma.hbm_to_vmem [thread:$0]  %s27_s14, 2048, %s29_s16, [#allocation6], %s536_s20, %s536_s20, %s537_s21  }
   0x6   :  { %s18_s23 = sshll.u32 %s538_s22, 4  ;;  %s40_s26 = sshll.u32 %s583_s2, 4  ;;  %s19_s23 = int_to_ptr.vmem [resolvable:$true] %s18_s23  ;;  %s41_s26 = int_to_ptr.hbm [resolvable:$true] %s40_s26 }
   0x7   :  { %21 = dma.hbm_to_vmem [thread:$0]  %s17_s19, 16, %s19_s23, [#allocation3]  }
   0x8   :  { %s539_s1 = smov [#allocation7]  }
   0x9   :  { %s42_s27 = sshll.u32 %s539_s1, 4  ;;  %s43_s27 = int_to_ptr.vmem [resolvable:$true] %s42_s27 }
   0xa   :  { %45 = dma.hbm_to_vmem [thread:$0]  %s41_s26, 128, %s43_s27, [#allocation6]  }
   0xb   :  { %529 = dma.done.wait [#allocation3], 16  }
   0xc   :  { %530 = vsyncadd [#allocation3], 4294967280 }
   0xd   :  { %531 = dma.done.wait [#allocation6], 2176  }
   0xe   :  { %532 = vsyncadd [#allocation6], 4294965120  ;;  %vm174_vm0 = vcmask 261120   ;;  %v373_v0 = vld [vmem:[#allocation5 + $0x40] sm:$0xf]  ;;  %vm301_vm1 = vcmask 1042434  }
   0xf   :  { %v423_v1 = vld [vmem:[#allocation5 + $0x5c] sm:$0xf0]  ;;  %v419_v2 = vld [vmem:[#allocation5 + $0x44] sm:$0xf]  ;;  %v381_v5 = vld [vmem:[#allocation5 + $0x48] sm:$0xf] }
  0x10   :  { %v374_v3 = vor.u32 %v423_v1, %v373_v0  ;;  %v375_v4 = vld [vmem:[#allocation5 + $0x60] sm:$0xf0]  ;;  %v424_v6 = vld [vmem:[#allocation5 + $0x64] sm:$0xf0]  ;;  %v420_v9 = vld [vmem:[#allocation5 + $0x4c] sm:$0xf] }
  0x11   :  { %v378_v7 = vor.u32 %v419_v2, %v375_v4  ;;  %v382_v8 = vor.u32 %v424_v6, %v381_v5  ;;  %v383_v10 = vld [vmem:[#allocation5 + $0x68] sm:$0xf0]  ;;  %v341_v11 = vld [vmem:[#allocation5] sm:$0xf]  ;;  %v411_v14 = vld [vmem:[#allocation5 + $0x4] sm:$0xf] }
  0x12   :  { %184 = vmatpush.bf16.msra.mxu0 %v374_v3  ;;  %v386_v12 = vor.u32 %v420_v9, %v383_v10  ;;  %v415_v13 = vld [vmem:[#allocation5 + $0x1c] sm:$0xf0]  ;;  %v343_v15 = vld [vmem:[#allocation5 + $0x20] sm:$0xf0]  ;;  %v349_v18 = vld [vmem:[#allocation5 + $0x8] sm:$0xf] }
  0x13   :  { %197 = vmatpush.bf16.msra.mxu1 %v378_v7  ;;  %210 = vmatpush.bf16.msra.mxu2 %v382_v8  ;;  %v342_v16 = vor.u32 %v415_v13, %v341_v11  ;;  %v346_v17 = vor.u32 %v411_v14, %v343_v15  ;;  %v416_v19 = vld [vmem:[#allocation5 + $0x24] sm:$0xf0]  ;;  %v412_v20 = vld [vmem:[#allocation5 + $0xc] sm:$0xf]  ;;  %v59_v23 = vld [vmem:[#allocation2] sm:$0x1] }
  0x14   :  { %223 = vmatpush.bf16.msra.mxu3 %v386_v12  ;;  %v350_v21 = vor.u32 %v416_v19, %v349_v18  ;;  %v351_v22 = vld [vmem:[#allocation5 + $0x28] sm:$0xf0]  ;;  %v397_v24 = vld [vmem:[#allocation5 + $0x58] sm:$0xf]  ;;  %v422_v27 = vld [vmem:[#allocation5 + $0x5c] sm:$0xf] }
  0x15   :  { %v354_v25 = vor.u32 %v412_v20, %v351_v22  ;;  %v426_v26 = vld [vmem:[#allocation5 + $0x74] sm:$0xf0]  ;;  %v399_v28 = vld [vmem:[#allocation5 + $0x78] sm:$0xf0]  ;;  %v389_v31 = vld [vmem:[#allocation5 + $0x50] sm:$0xf] }
  0x16   :  { %185 = vmatpush.bf16.msra.mxu0 %v342_v16  ;;  %v398_v29 = vor.u32 %v426_v26, %v397_v24  ;;  %v402_v30 = vor.u32 %v422_v27, %v399_v28  ;;  %v425_v32 = vld [vmem:[#allocation5 + $0x6c] sm:$0xf0]  ;;  %v421_v33 = vld [vmem:[#allocation5 + $0x54] sm:$0xf]  ;;  %v365_v36 = vld [vmem:[#allocation5 + $0x18] sm:$0xf] }
  0x17   :  { %198 = vmatpush.bf16.msra.mxu1 %v346_v17  ;;  %211 = vmatpush.bf16.msra.mxu2 %v350_v21  ;;  %v390_v34 = vor.u32 %v425_v32, %v389_v31  ;;  %v391_v35 = vld [vmem:[#allocation5 + $0x70] sm:$0xf0]  ;;  %v418_v37 = vld [vmem:[#allocation5 + $0x34] sm:$0xf0]  ;;  %v414_v40 = vld [vmem:[#allocation5 + $0x1c] sm:$0xf] }
  0x18   :  { %224 = vmatpush.bf16.msra.mxu3 %v354_v25  ;;  %v394_v38 = vor.u32 %v421_v33, %v391_v35  ;;  %v366_v39 = vor.u32 %v418_v37, %v365_v36  ;;  %v367_v41 = vld [vmem:[#allocation5 + $0x38] sm:$0xf0]  ;;  %v357_v42 = vld [vmem:[#allocation5 + $0x10] sm:$0xf]  ;;  %v413_v45 = vld [vmem:[#allocation5 + $0x14] sm:$0xf] }
  0x19   :  { %403 = vmatmul.msk.bf16.vlgmr.msra.gmra.mxu0 %vm174_vm0, %v59_v23  ;;  %v370_v43 = vor.u32 %v414_v40, %v367_v41  ;;  %v417_v44 = vld [vmem:[#allocation5 + $0x2c] sm:$0xf0]  ;;  %v359_v46 = vld [vmem:[#allocation5 + $0x30] sm:$0xf0]  ;;  %v76_v55 = vld [vmem:[#allocation7] sm:$0xff]  ;;  %vm307_vm2 = vcmask 1044484  }
  0x1a   :  { %404 = vmatmul.msk.bf16.vlgmr.msra.gmra.mxu1 %vm174_vm0, %v59_v23  ;;  %405 = vmatmul.msk.bf16.vlgmr.msra.gmra.mxu2 %vm174_vm0, %v59_v23  ;;  %v358_v47 = vor.u32 %v417_v44, %v357_v42  ;;  %v362_v48 = vor.u32 %v413_v45, %v359_v46  ;;  %v80_v56 = vperm.slane %v76_v55, 2  ;;  %v81_v57 = vperm.slane %v76_v55, 3  ;;  %s540_s0 = smov [#allocation8]   ;;  %s328_s30 = sshll.u32 %s584_s3, 4  ;;  %s329_s30 = int_to_ptr.hbm [resolvable:$true] %s328_s30 }
  0x1b   :  { %262 = vmatpush.bf16.msrb.mxu2 %v398_v29  ;;  %406 = vmatmul.msk.bf16.vlgmr.msra.gmra.mxu3 %vm174_vm0, %v59_v23  ;;  %v82_v58 = vperm.slane %v76_v55, 4  ;;  %v83_v59 = vperm.slane %v76_v55, 5  ;;  %v78_v60 = vperm.slane %v76_v55, 0  ;;  %v79_v61 = vperm.slane %v76_v55, 1  ;;  %s326_s2 = sshll.u32 %s540_s0, 4  ;;  %s327_s2 = int_to_ptr.vmem [resolvable:$true] %s326_s2 }
  0x1c   :  { %275 = vmatpush.bf16.msrb.mxu3 %v402_v30  ;;  %236 = vmatpush.bf16.msrb.mxu0 %v390_v34  ;;  %v84_v9 = vperm.slane %v76_v55, 6  ;;  %v85_v11 = vperm.slane %v76_v55, 7  ;;  %vm297_vm3 = vcmask 1040384   ;;  %vm305_vm4 = vcmask 1041408  }
  0x1d   :  { %249 = vmatpush.bf16.msrb.mxu1 %v394_v38  ;;  %vm311_vm5 = vcmask 1046534   ;;  %vm315_vm6 = vcmask 1045508   ;;  %vm317_vm7 = vcmask 1043456  }
  0x1f   :  { %263 = vmatpush.bf16.msrb.mxu2 %v366_v39 }
  0x20   :  { %276 = vmatpush.bf16.msrb.mxu3 %v370_v43  ;;  %237 = vmatpush.bf16.msrb.mxu0 %v358_v47 }
  0x21   :  { %250 = vmatpush.bf16.msrb.mxu1 %v362_v48 }
  0x29   :  { %407 = vmatmul.msk.bf16.vlgmr.msrb.gmra.mxu0 %vm174_vm0, %v59_v23 }
  0x2a   :  { %408 = vmatmul.msk.bf16.vlgmr.msrb.gmra.mxu1 %vm174_vm0, %v59_v23  ;;  %409 = vmatmul.msk.bf16.vlgmr.msrb.gmra.mxu2 %vm174_vm0, %v59_v23 }
  0x2b   :  { %410 = vmatmul.msk.bf16.vlgmr.msrb.gmra.mxu3 %vm174_vm0, %v59_v23 }
  0x96   :  { %v187_v49 = vpop.f32.mrf.mxu0 }
  0x97   :  { %v200_v50 = vpop.f32.mrf.mxu1  ;;  %v188_v6 = vadd.f32 %v187_v49, %v78_v60 }
  0x98   :  { %v201_v7 = vadd.f32 %v200_v50, %v79_v61 }
  0x9a   :  { %v282_v12 = vpack.c.bf16 %v201_v7, %v188_v6 }
  0x9c   :  { %v290_v23 = vrot.slane %v282_v12, 3 }
  0x9d   :  { %v213_v51 = vpop.f32.mrf.mxu2 }
  0x9e   :  { %v226_v52 = vpop.f32.mrf.mxu3  ;;  %v189_v53 = vpop.f32.mrf.mxu0  ;;  %v214_v63 = vadd.f32 %v213_v51, %v80_v56  ;;  %v300_v29 = vsel %vm297_vm3, %v282_v12, %v290_v23 }
  0x9f   :  { %v202_v54 = vpop.f32.mrf.mxu1  ;;  %v227_v0 = vadd.f32 %v226_v52, %v81_v57 }
  0xa1   :  { %v283_v8 = vpack.c.bf16 %v227_v0, %v214_v63 }
  0xa3   :  { %v291_v14 = vrot.slane %v283_v8, 6  ;;  %v292_v18 = vrot.slane %v283_v8, 1 }
  0xa5   :  { %v215_v62 = vpop.f32.mrf.mxu2  ;;  %v304_v27 = vsel %vm301_vm1, %v291_v14, %v292_v18 }
  0xa6   :  { %v228_v1 = vpop.f32.mrf.mxu3  ;;  %v239_v2 = vpop.f32.mrf.mxu0  ;;  %v306_v33 = vsel %vm305_vm4, %v300_v29, %v304_v27 }
  0xa7   :  { %v240_v3 = vadd.f32 %v239_v2, %v82_v58  ;;  %v252_v4 = vpop.f32.mrf.mxu1 }
  0xa8   :  { %v253_v5 = vadd.f32 %v252_v4, %v83_v59 }
  0xaa   :  { %v284_v10 = vpack.c.bf16 %v253_v5, %v240_v3 }
  0xac   :  { %v293_v19 = vrot.slane %v284_v10, 4  ;;  %v294_v20 = vrot.slane %v284_v10, 7 }
  0xad   :  { %v265_v13 = vpop.f32.mrf.mxu2 }
  0xae   :  { %v266_v15 = vadd.f32 %v265_v13, %v84_v9  ;;  %v278_v16 = vpop.f32.mrf.mxu3  ;;  %v241_v17 = vpop.f32.mrf.mxu0  ;;  %v310_v28 = vsel %vm307_vm2, %v293_v19, %v294_v20 }
  0xaf   :  { %v279_v21 = vadd.f32 %v278_v16, %v85_v11  ;;  %v254_v22 = vpop.f32.mrf.mxu1 }
  0xb1   :  { %v285_v24 = vpack.c.bf16 %v279_v21, %v266_v15 }
  0xb3   :  { %v295_v25 = vrot.slane %v285_v24, 2  ;;  %v296_v26 = vrot.slane %v285_v24, 5 }
  0xb5   :  { %v267_v30 = vpop.f32.mrf.mxu2  ;;  %v314_v31 = vsel %vm311_vm5, %v295_v25, %v296_v26 }
  0xb6   :  { %v280_v32 = vpop.f32.mrf.mxu3  ;;  %v316_v34 = vsel %vm315_vm6, %v310_v28, %v314_v31 }
  0xb7   :  { %v318_v35 = vsel %vm317_vm7, %v306_v33, %v316_v34 }
  0xb8   :  { %320 = vst [vmem:[#allocation8] sm:$0xff] %v318_v35 }
  0xb9   :  { %331 = dma.vmem_to_hbm [thread:$0]  %s327_s2, 128, %s329_s30, [#allocation4]  }
  0xba   :  { %533 = dma.done.wait [#allocation4], 128  }
  0xbb   :  { %534 = vsyncadd [#allocation4], 4294967168 }
  0xbc   :  { %336 = vsyncpa [#allocation3], 1 }
  0xbd   :  { %337 = vsyncpa [#allocation6], 1 }
  0xbe   :  { %338 = vsyncpa [#allocation4], 1 }

</bundles_post_ra>
